<compile_context>
chip_gen: v7x
topology: tpu7x:2x2x1
jax: 0.10.0
libtpu: 0.0.40
codegen_flags: <defaults>
</compile_context>

<pallas_src>
import math

import jax
import jax.numpy as jnp
from jax.experimental import pallas as pl
from jax.experimental.pallas import tpu as pltpu


def _cdiv(a, b):
    return (a + b - 1) // b


def _physical_vmem_bytes(default=64 * 1024 * 1024):
    """Best-effort physical VMEM query; falls back to the v7x (smallest) size."""
    try:
        info = pltpu.get_tpu_info()
    except Exception:
        return default
    for name in ("vmem_capacity_bytes", "vmem_size_bytes", "vmem_bytes"):
        v = getattr(info, name, None)
        if isinstance(v, int) and v > 0:
            return v
    return default


def film_kernel(gamma_ref, beta_ref, x_ref, out_ref):
    # gamma_ref/beta_ref: (1, 1, k*D) f32, resident per batch row.
    # x_ref/out_ref:      (1, rows, k*D) streamed (auto double-buffered pipeline).
    # Pure FMA stream; f32 math (safe on v5e, which has no bf16 VALU), cast on store.
    g = gamma_ref[...]
    b = beta_ref[...]
    out_ref[...] = (g * x_ref[...].astype(jnp.float32) + b).astype(out_ref.dtype)


def film_forward(x, embedding, weight, bias, *, rows_target=8192):
    """FiLM forward pass.

    x:         (B, T, D)
    embedding: (B, E)
    weight:    (E, 2*D)  -- torch Linear weight transposed; columns [:D] produce beta,
               columns [D:] produce gamma (matches params.view(B, 2, D) semantics).
    bias:      (2*D,)
    """
    B, T, D = x.shape
    E = embedding.shape[1]
    assert embedding.shape[0] == B
    assert weight.shape == (E, 2 * D) and bias.shape == (2 * D,)
    itemsize = jnp.dtype(x.dtype).itemsize

    # ---- FiLM generator, hoisted: tiny (B,E)@(E,2D) matmul, not worth a kernel. ----
    params = (embedding.astype(jnp.float32) @ weight.astype(jnp.float32)
              + bias.astype(jnp.float32))                       # (B, 2D)
    beta, gamma = params[:, :D], params[:, D:]                  # (B, D) each

    # ---- Lane-dense folding: k consecutive timesteps per folded row so the last
    #      block dim is a multiple of 128 (full vregs, unmasked stores). ----
    k = 1 if D % 128 == 0 else 128 // math.gcd(D, 128)
    d_lane = k * D
    gamma_t = jnp.tile(gamma, (1, k)).reshape(B, 1, d_lane)     # matches lane folding
    beta_t = jnp.tile(beta, (1, k)).reshape(B, 1, d_lane)

    # Pad T only to a multiple of k (at most k-1 timesteps); no rounding to tile size.
    pad = (-T) % k
    if pad:
        x = jnp.pad(x, ((0, 0), (0, pad), (0, 0)))
    t_pad = T + pad
    t_fold = t_pad // k
    x_f = x.reshape(B, t_fold, d_lane)                          # contiguous: free

    # ---- T tile (folded rows): as large as the VMEM stream budget allows
    #      (x + out, each double-buffered), rounded to dtype-aware sublane multiple. ----
    vmem_limit = max(32 * 1024 * 1024,
                     min(_physical_vmem_bytes() - 16 * 1024 * 1024, 112 * 1024 * 1024))
    stream_budget = vmem_limit // 2           # headroom for residents + Mosaic internals
    sub = 8 * max(1, 4 // itemsize)           # 8 (f32) / 16 (bf16) / 32 (int8/fp8)
    rows_cap = stream_budget // (4 * d_lane * itemsize)
    rows_cap = max(sub, (rows_cap // sub) * sub)
    rows = max(sub, (min(rows_target, rows_cap) // sub) * sub)
    if t_fold <= rows:
        rows = t_fold                          # single tile equals full folded extent
        t_tiles = 1
    else:
        t_tiles = _cdiv(t_fold, rows)          # last tile may be partial (clipped DMA)

    out_f = pl.pallas_call(
        film_kernel,
        out_shape=jax.ShapeDtypeStruct((B, t_fold, d_lane), x.dtype),
        grid=(B, t_tiles),
        in_specs=[
            pl.BlockSpec((1, 1, d_lane), lambda b, t: (b, 0, 0)),      # gamma (per-row)
            pl.BlockSpec((1, 1, d_lane), lambda b, t: (b, 0, 0)),      # beta  (per-row)
            pl.BlockSpec((1, rows, d_lane), lambda b, t: (b, t, 0)),   # x stream
        ],
        out_specs=pl.BlockSpec((1, rows, d_lane), lambda b, t: (b, t, 0)),
        compiler_params=pltpu.CompilerParams(
            dimension_semantics=("parallel", "parallel"),   # B and T both splittable
            vmem_limit_bytes=vmem_limit,
        ),
    )(gamma_t, beta_t, x_f)

    out = out_f.reshape(B, t_pad, D)                            # contiguous: free
    if pad:
        out = out[:, :T, :]
    return out


if __name__ == "__main__":
    B, T, D, E = 2, 8, 32, 16  # batch, seq, input_dim, embedding_dim

    key = jax.random.PRNGKey(0)
    kx, ke, kw, kb = jax.random.split(key, 4)

    x = jax.random.normal(kx, (B, T, D), dtype=jnp.float32)
    embedding = jax.random.normal(ke, (B, E), dtype=jnp.float32)

    # nn.Linear-style init: U(-1/sqrt(E), 1/sqrt(E)); `weight` here == torch W.T, with
    # columns [0:D] producing beta and [D:2D] producing gamma (view(B,2,D) semantics).
    bound = 1.0 / math.sqrt(E)
    weight = jax.random.uniform(kw, (E, 2 * D), jnp.float32, -bound, bound)
    bias = jax.random.uniform(kb, (2 * D,), jnp.float32, -bound, bound)

    # --- small-shape check (matches the module's example sizes) ---
    out = jax.block_until_ready(film_forward(x, embedding, weight, bias))

    params_ref = embedding @ weight + bias                      # (B, 2D)
    beta_ref = params_ref[:, :D][:, None, :]
    gamma_ref = params_ref[:, D:][:, None, :]
    ref = gamma_ref * x + beta_ref
    assert jnp.allclose(out, ref, atol=1e-5, rtol=1e-5), "mismatch vs reference (small)"

    # --- larger T: exercises ragged-T (T % k != 0 -> minimal pad), multi-tile sweep,
    #     and the partial last tile (clipped boundary DMA) with a small rows_target ---
    T2 = 4106
    x2 = jax.random.normal(kx, (B, T2, D), dtype=jnp.float32)
    out2 = jax.block_until_ready(
        film_forward(x2, embedding, weight, bias, rows_target=256))
    ref2 = gamma_ref * x2 + beta_ref
    assert jnp.allclose(out2, ref2, atol=1e-5, rtol=1e-5), "mismatch vs reference (tiled)"

    print("KERNEL_OK")
</pallas_src>

<mosaic_0001>
module attributes {stable_mosaic.version = 11 : i64} {
  func.func @film_kernel(%arg0: i32, %arg1: i32, %arg2: memref<1x1x128xf32, #tpu.memory_space<vmem>>, %arg3: memref<1x1x128xf32, #tpu.memory_space<vmem>>, %arg4: memref<1x2x128xf32, #tpu.memory_space<vmem>>, %arg5: memref<1x2x128xf32, #tpu.memory_space<vmem>>) attributes {dimension_semantics = [#tpu.dimension_semantics<parallel>, #tpu.dimension_semantics<parallel>], iteration_bounds = array<i64: 2, 1>, scalar_prefetch = 0 : i64, scratch_operands = 0 : i64, tpu.core_type = #tpu.core_type<tc>, window_params = [{transform_indices = @transform_0, window_bounds = array<i64: 1, 1, 128>}, {transform_indices = @transform_1, window_bounds = array<i64: 1, 1, 128>}, {transform_indices = @transform_2, window_bounds = array<i64: 1, 2, 128>}, {transform_indices = @transform_3, window_bounds = array<i64: 1, 2, 128>}]} {
    %c0 = arith.constant 0 : index
    %c0_0 = arith.constant 0 : index
    %c0_1 = arith.constant 0 : index
    %0 = vector.load %arg2[%c0, %c0_0, %c0_1] : memref<1x1x128xf32, #tpu.memory_space<vmem>>, vector<1x1x128xf32>
    %c0_2 = arith.constant 0 : index
    %c0_3 = arith.constant 0 : index
    %c0_4 = arith.constant 0 : index
    %1 = vector.load %arg3[%c0_2, %c0_3, %c0_4] : memref<1x1x128xf32, #tpu.memory_space<vmem>>, vector<1x1x128xf32>
    %c0_5 = arith.constant 0 : index
    %c0_6 = arith.constant 0 : index
    %c0_7 = arith.constant 0 : index
    %2 = vector.load %arg4[%c0_5, %c0_6, %c0_7] : memref<1x2x128xf32, #tpu.memory_space<vmem>>, vector<1x2x128xf32>
    %3 = vector.broadcast %0 : vector<1x1x128xf32> to vector<1x2x128xf32>
    %4 = arith.mulf %3, %2 : vector<1x2x128xf32>
    %5 = vector.broadcast %1 : vector<1x1x128xf32> to vector<1x2x128xf32>
    %6 = arith.addf %4, %5 : vector<1x2x128xf32>
    %c0_8 = arith.constant 0 : index
    %c0_9 = arith.constant 0 : index
    %c0_10 = arith.constant 0 : index
    %7 = vector.load %arg5[%c0_8, %c0_9, %c0_10] : memref<1x2x128xf32, #tpu.memory_space<vmem>>, vector<1x2x128xf32>
    tpu.vector_store %arg5[%c0_8, %c0_9, %c0_10], %6 {strides = array<i32>} : memref<1x2x128xf32, #tpu.memory_space<vmem>>, vector<1x2x128xf32>,
    return
  }
  func.func @transform_0(%arg0: i32, %arg1: i32) -> (i32, i32, i32) {
    %c0_i32 = arith.constant 0 : i32
    %c0_i32_0 = arith.constant 0 : i32
    %c0_i32_1 = arith.constant 0 : i32
    return %arg0, %c0_i32, %c0_i32_0 : i32, i32, i32
  }
  func.func @transform_1(%arg0: i32, %arg1: i32) -> (i32, i32, i32) {
    %c0_i32 = arith.constant 0 : i32
    %c0_i32_0 = arith.constant 0 : i32
    %c0_i32_1 = arith.constant 0 : i32
    return %arg0, %c0_i32, %c0_i32_0 : i32, i32, i32
  }
  func.func @transform_2(%arg0: i32, %arg1: i32) -> (i32, i32, i32) {
    %c0_i32 = arith.constant 0 : i32
    %c0_i32_0 = arith.constant 0 : i32
    return %arg0, %arg1, %c0_i32 : i32, i32, i32
  }
  func.func @transform_3(%arg0: i32, %arg1: i32) -> (i32, i32, i32) {
    %c0_i32 = arith.constant 0 : i32
    %c0_i32_0 = arith.constant 0 : i32
    return %arg0, %arg1, %c0_i32 : i32, i32, i32
  }
}

</mosaic_0001>

<bundles_post_ra>
// kernel: tpu_custom_call.1
= control target key start
LH: loop header
LB: loop body
LE: loop exit
PB: predicated region body
PF: predicated region fallthrough
CT: control target
= control target key end

     0   :  { %8 = vsyncpa [#allocation3], 0  ;;  %s765_s0 = inlined_call_operand.hbm [shape: f32[2,1,128], index: 0, kind: input, shape index: {}]   ;;  %s766_s1 = inlined_call_operand.vmem [shape: f32[2,1,128], index: 1, kind: input, shape index: {}]   ;;  %s767_s2 = inlined_call_operand.vmem [shape: f32[2,2,128], index: 2, kind: input, shape index: {}]   ;;  %s768_s3 = inlined_call_operand.hbm [shape: f32[2,2,128], index: 3, kind: output, shape index: {}]  }
   0x1   :  { %10 = vsyncpa [#allocation3 + $0x1], 0 }
   0x2   :  { %11 = vsyncpa [#allocation4], 0 }
   0x3   :  { %13 = vsyncpa [#allocation4 + $0x1], 0  ;;  %s584_s12 = smov 0   ;;  %s586_s13 = smov 0  }
   0x4   :  { %s588_s14 = smov 0   ;;  %s590_s15 = smov 0  }
   0x5   :  { %s592_s16 = smov 0   ;;  %s594_s17 = smov 0  }
   0x6 LB: > { %s372_s18 = sadd.s32 4294967295, %s560_s17   ;;  %s373_s19 = sadd.s32 4294967294, %s560_s17   ;;  %s560_s17 = sphi %s594_s17, %s19_s17   ;;  %s556_s16 = sphi %s592_s16, %s784_s16   ;;  %s552_s15 = sphi %s590_s15, %s783_s15   ;;  %s548_s14 = sphi %s588_s14, %s782_s14   ;;  %s544_s13 = sphi %s586_s13, %s781_s13   ;;  %s540_s12 = sphi %s584_s12, %s780_s12  }
   0x7   : > { %s31_s20 = sadd.s32 1, %s556_s16  ;;  %s38_s21 = sadd.s32 1, %s548_s14 }
   0x8   : > { %p33_p0 = scmp.ge.s32.totalorder %s31_s20, 2  ;;  %p45_p1 = scmp.ne.s32.totalorder %s548_s14, %s544_s13 }
   0x9   : > { %p46_p2 = scmp.eq.s32.totalorder %s560_s17, 0  ;;  %p51_p3 = scmp.ne.s32.totalorder %s544_s13, %s540_s12 }
   0xa   : > { %s786_s20 = smov (%p33_p0, %s31_s20), 0  ;;  %p52_p5 = scmp.eq.s32.totalorder %s372_s18, 0 }
   0xb   : > { %p625_p4 = por %p46_p2, %p45_p1  ;;  %s35_s23 = ssub.s32 %s556_s16, %s786_s20 }
   0xc   : > { %p131_p6 = scmp.eq.s32.totalorder %s372_s18, 1  ;;  %p36_p7 = scmp.eq.s32.totalorder %s35_s23, 0 }
   0xd   : > { %p631_p8 = por %p52_p5, %p51_p3  ;;  %p137_p10 = scmp.eq.s32.totalorder %s373_s19, 1 }
   0xe   : > { %p635_p9 = por %p131_p6, %p45_p1  ;;  %p398_p13 = scmp.lt.s32.totalorder %s560_s17, 2 }
   0xf   : > { %s640_s26 = scalar_select %p36_p7, %s548_s14, %s38_s21  }
  0x10   : > { %s772_s25 = scalar_select %p635_p9, 1, 0 }
  0x11   : > { %p642_p11 = por %p137_p10, %p51_p3  ;;  %s157_s28 = sand.u32 1, %s548_s14  }
  0x12   : > { %s376_s29 = sshll.u32 %s556_s16, 4  ;;  %s160_s30 = scalar_lea.vmem [#allocation2], %s157_s28 }
  0x13   : > { %s773_s27 = scalar_select %p642_p11, 1, 0 }
  0x14   : > { %s167_s4 = sshll.u32 %s160_s30, 4  ;;  %s653_s7 = scalar_lea.hbm %s765_s0, %s376_s29  ;;  %s655_s4 = int_to_ptr.vmem [resolvable:$true] %s167_s4 }
  0x15   : > { %p659_p0 = pnand %p398_p13, %p625_p4  ;;  %s158_s9 = scalar_lea.sflag [#allocation3], %s157_s28 }
  0x16   : > { %s448_s10 = scalar_lea.hbm %s653_s7, 16  ;;  %s453_s19 = scalar_lea.hbm %s765_s0, 32 }
  0x17   : > { %p449_p3 = scmp.ne.s32.totalorder %s653_s7, %s448_s10  ;;  %p450_p5 = pneg %p659_p0 }
  0x18   : > { %p454_p4 = scmp.lt.u32.totalorder %s653_s7, %s765_s0  ;;  %p455_p10 = scmp.lt.u32.totalorder %s453_s19, %s448_s10 }
  0x19   : > { %p451_p6 = pnand %p450_p5, %p449_p3  ;;  %p457_p12 = scmp.lt.u32.totalorder %s448_s10, %s653_s7 }
  0x1a   : > { %p456_p13 = por %p455_p10, %p454_p4 }
  0x1b   : > { %p452_p7 = pneg %p451_p6 }
  0x1c   : > { %p458_p1 = por %p457_p12, %p456_p13 }
  0x1e   : > { %p459_p2 = pnand %p458_p1, %p452_p7 }
  0x20   : > { %462 = shalt.err (!%p459_p2)
}
  0x21   : > { %s463_s23 = scalar_lea.vmem %s655_s4, 16  ;;  %s562_s28 = smov [#allocation2]  }
  0x22   : > { %p464_p3 = scmp.ne.s32.totalorder %s655_s4, %s463_s23  ;;  %s468_s29 = sshll.u32 %s562_s28, 4  ;;  %s469_s29 = int_to_ptr.vmem [resolvable:$false] %s468_s29 }
  0x23   : > { %s470_s30 = scalar_lea.vmem %s469_s29, 32  ;;  %p471_p9 = scmp.lt.s32.totalorder %s655_s4, %s469_s29 }
  0x24   : > { %p466_p6 = pnand %p464_p3, %p450_p5  ;;  %p472_p4 = scmp.lt.s32.totalorder %s470_s30, %s463_s23 }
  0x26   : > { %p467_p11 = pneg %p466_p6  ;;  %p473_p10 = por %p472_p4, %p471_p9 }
  0x28   : > { %p474_p12 = pnand %p473_p10, %p467_p11 }
  0x2a   : > { %477 = shalt.err (!%p474_p12)
}
  0x2b   : > { %393 = dma.hbm_to_vmem [thread:$0]  (!%p659_p0), %s653_s7, 16, %s655_s4, %s158_s9  }
  0x2c   : > { %p775_p1 = scmp.lt.s32.totalorder %s560_s17, 3  ;;  %p776_p2 = scmp.ge.s32.totalorder %s560_s17, 1 }
  0x2e   : > { %p189_p5 = pnand %p776_p2, %p775_p1 }
  0x2f   : > { %s695_s5 = sand.u32 (!%p189_p5), 1, %s544_s13  }
  0x30   : > { %192 = sbr.rel (%p189_p5) target bundleno = 85 (0x55), region = 32  ;;  %s195_s6 = scalar_lea.sflag (!%p189_p5), [#allocation3], %s695_s5 }
  0x31   : > { %s197_s10 = scalar_lea.vmem (!%p189_p5), [#allocation2], %s695_s5 }
  0x37   : > { %531 = dma.done.wait (%p631_p8), %s195_s6, 16  }
  0x38   : > { %533 = vsyncadd (%p631_p8), %s195_s6, 4294967280  ;;  %s378_s4 = sshll.u32 %s695_s5, 1  ;;  %p229_p9 = scmp.lt.s32.totalorder %s552_s15, 1  ;;  %v380_v0 = vld [vmem:[%s197_s10] ss:$0 sm:$0xff] }
  0x39   : > { %s228_s24 = scalar_lea.vmem [#allocation5], %s378_s4  ;;  %s383_s28 = sshll.u32 %s552_s15, 5 }
  0x3a   : > { %s230_s7 = scalar_select %p229_p9, %s552_s15, 1 }
  0x3b   : > { %s272_s23 = sshll.u32 %s228_s24, 4  ;;  %s718_s6 = scalar_lea.hbm %s768_s3, %s383_s28  ;;  %s713_s23 = int_to_ptr.vmem [resolvable:$true] %s272_s23 }
  0x3c   : > { %s231_s11 = scalar_lea.vmem %s766_s1, %s230_s7  ;;  %s379_s18 = sshll.u32 %s230_s7, 1 }
  0x3d   : > { %s238_s22 = scalar_lea.vmem %s767_s2, %s379_s18  ;;  %v381_v1 = vld [vmem:[%s231_s11] ss:$0 sm:$0xff]  ;;  %s258_s7 = scalar_lea.sflag [#allocation4], %s695_s5 }
  0x3e   : > { %v241_v2 = vld [vmem:[%s238_s22] sm:$0x3]  ;;  %s478_s4 = scalar_lea.vmem %s713_s23, 32  ;;  %p777_p11 = scmp.ne.s32.totalorder %s772_s25, 0 }
  0x3f   : > { %v248_v3 = vmul.f32 %v380_v0, %v241_v2  ;;  %p479_p8 = scmp.ne.s32.totalorder %s713_s23, %s478_s4  ;;  %s563_s15 = smov [#allocation5]  }
  0x40   : > { %s482_s10 = sshll.u32 %s563_s15, 4  ;;  %s483_s10 = int_to_ptr.vmem [resolvable:$false] %s482_s10 }
  0x41   : > { %v255_v4 = vadd.f32 %v381_v1, %v248_v3  ;;  %p480_p0 = pnand %p479_p8, %p777_p11  ;;  %s484_s8 = scalar_lea.vmem %s483_s10, 64 }
  0x42   : > { %p485_p13 = scmp.lt.s32.totalorder %s713_s23, %s483_s10  ;;  %p486_p3 = scmp.lt.s32.totalorder %s484_s8, %s478_s4 }
  0x43   : > { %256 = vst [vmem:[%s228_s24] sm:$0x3] %v255_v4  ;;  %p481_p7 = pneg %p480_p0 }
  0x44   : > { %p487_p6 = por %p486_p3, %p485_p13 }
  0x46   : > { %p488_p4 = pnand %p487_p6, %p481_p7 }
  0x48   : > { %491 = shalt.err (!%p488_p4)
}
  0x49   : > { %s492_s5 = scalar_lea.hbm %s718_s6, 32  ;;  %s496_s18 = scalar_lea.hbm %s768_s3, 64 }
  0x4a   : > { %p493_p10 = scmp.ne.s32.totalorder %s718_s6, %s492_s5  ;;  %p497_p2 = scmp.lt.u32.totalorder %s718_s6, %s768_s3 }
  0x4b   : > { %p498_p5 = scmp.lt.u32.totalorder %s496_s18, %s492_s5  ;;  %p500_p8 = scmp.lt.u32.totalorder %s492_s5, %s718_s6 }
  0x4c   : > { %p494_p12 = pnand %p493_p10, %p777_p11 }
  0x4d   : > { %p499_p9 = por %p498_p5, %p497_p2 }
  0x4e   : > { %p495_p1 = pneg %p494_p12 }
  0x4f   : > { %p501_p0 = por %p500_p8, %p499_p9 }
  0x51   : > { %p502_p7 = pnand %p501_p0, %p495_p1 }
  0x53   : > { %505 = shalt.err (!%p502_p7)
}
  0x54   : > { %388 = dma.vmem_to_hbm [thread:$0]  (%p777_p11), %s713_s23, 32, %s718_s6, %s258_s7  }
  0x55 PF: > { %s284_s22 = sand.u32 1, %s540_s12   ;;  %p778_p13 = scmp.ne.s32.totalorder %s773_s27, 0 }
  0x56   : > { %p779_p3 = scmp.ge.s32.totalorder %s560_s17, 2  ;;  %s285_s24 = scalar_lea.sflag [#allocation4], %s284_s22 }
  0x58   : > { %p395_p6 = pnand %p779_p3, %p778_p13 }
  0x5a   : > { %535 = dma.done.wait (!%p395_p6), %s285_s24, 32  }
  0x5b   : > { %537 = vsyncadd (!%p395_p6), %s285_s24, 4294967264  ;;  %s19_s17 = sadd.s32 1, %s560_s17   ;;  %s780_s12 = smov %s544_s13 }
  0x5c   : > { %p16_p4 = scmp.ge.s32.totalorder %s19_s17, 4   ;;  %s781_s13 = smov %s548_s14 }
  0x5d   : > { %s782_s14 = smov %s640_s26  ;;  %s783_s15 = smov %s556_s16 }
  0x5e   : > { %s784_s16 = smov %s786_s20  ;;  %18 = sbr.rel (!%p16_p4) target bundleno = 6 (0x6), region = 83 }
  0x65   :  { %290 = vsyncpa [#allocation3], 1 }
  0x66   :  { %292 = vsyncpa [#allocation3 + $0x1], 1 }
  0x67   :  { %293 = vsyncpa [#allocation4], 1 }
  0x68   :  { %295 = vsyncpa [#allocation4 + $0x1], 1 }

</bundles_post_ra>
